<compile_context>
chip_gen: v7x
topology: tpu7x:2x2x1
jax: 0.10.0
libtpu: 0.0.40
codegen_flags: <defaults>
</compile_context>

<pallas_src>
import functools

import jax
import jax.numpy as jnp
from jax import lax
from jax.experimental import pallas as pl
from jax.experimental.pallas import tpu as pltpu


_EPS = 1e-8


def _round_up(x: int, m: int) -> int:
    return ((x + m - 1) // m) * m


def _make_graph_learn_kernel(low_threshold: float, high_threshold: float):
    low = float(low_threshold)
    high = float(high_threshold)

    def kernel(xr_ref, xc_ref, adj_ref, out_ref):
        i = pl.program_id(0)
        j = pl.program_id(1)

        # Normalize the row-block and column-block of x (f32 math, EUP rsqrt),
        # then cast back to the native dtype so bf16 inputs hit the fast MXU
        # path with an f32 accumulator.
        xr = xr_ref[...].astype(jnp.float32)                     # (TM, Dp)
        xc = xc_ref[...].astype(jnp.float32)                     # (TN, Dp)
        inv_r = lax.rsqrt(jnp.maximum(jnp.sum(xr * xr, axis=-1, keepdims=True),
                                      _EPS * _EPS))              # (TM, 1)
        inv_c = lax.rsqrt(jnp.maximum(jnp.sum(xc * xc, axis=-1, keepdims=True),
                                      _EPS * _EPS))              # (TN, 1)
        xrn = (xr * inv_r).astype(xr_ref.dtype)
        xcn = (xc * inv_c).astype(xc_ref.dtype)

        # Transpose-free Gram of the normalized blocks == cosine tile.
        cos = lax.dot_general(xrn, xcn, (((1,), (1,)), ((), ())),
                              preferred_element_type=jnp.float32)  # (TM, TN)

        adj = adj_ref[...].astype(jnp.float32)
        res = jnp.where(cos < low, 0.0, jnp.where(cos > high, 1.0, adj))
        out_ref[...] = res.astype(out_ref.dtype)

        # Zero the diagonal -- only diagonal tiles pay for the iotas/select.
        @pl.when(i == j)
        def _():
            tm, tn = res.shape
            row = lax.broadcasted_iota(jnp.int32, (tm, tn), 0)
            col = lax.broadcasted_iota(jnp.int32, (tm, tn), 1)
            out_ref[...] = jnp.where(row == col, 0.0, res).astype(out_ref.dtype)

    return kernel


def low_high_cosine_graph_learn(semantic_x, adj,
                                low_sim_threshold=0.2,
                                high_sim_threshold=0.8,
                                tile=256):
    """semantic_x: (N, D) array, adj: (N, N) array -> (N, N) refined adjacency."""
    n, d = semantic_x.shape
    assert adj.shape == (n, n)

    # Lane-dense, MXU-friendly padding: N -> multiple of the tile (itself a
    # multiple of 128), D -> multiple of 128. Zero rows get cos == 0 (< low)
    # so padded region is harmless and cropped away below.
    tile = min(int(tile), _round_up(n, 128))
    tile = _round_up(tile, 128)
    n_pad = _round_up(n, tile)
    d_pad = _round_up(d, 128)

    x_p = jnp.pad(semantic_x, ((0, n_pad - n), (0, d_pad - d)))
    adj_p = jnp.pad(adj, ((0, n_pad - n), (0, n_pad - n)))

    kernel = _make_graph_learn_kernel(low_sim_threshold, high_sim_threshold)
    grid = (n_pad // tile, n_pad // tile)

    out_p = pl.pallas_call(
        kernel,
        out_shape=jax.ShapeDtypeStruct((n_pad, n_pad), adj.dtype),
        grid=grid,
        in_specs=[
            pl.BlockSpec((tile, d_pad), lambda i, j: (i, 0)),   # x row block
            pl.BlockSpec((tile, d_pad), lambda i, j: (j, 0)),   # x col block
            pl.BlockSpec((tile, tile), lambda i, j: (i, j)),    # adj tile
        ],
        out_specs=pl.BlockSpec((tile, tile), lambda i, j: (i, j)),
        compiler_params=pltpu.CompilerParams(
            dimension_semantics=("parallel", "parallel")),
    )(x_p, x_p, adj_p)

    return out_p[:n, :n]


def _reference(semantic_x, adj, low=0.2, high=0.8):
    x = semantic_x.astype(jnp.float32)
    norms = jnp.maximum(jnp.linalg.norm(x, axis=-1, keepdims=True), _EPS)
    cos = (x @ x.T) / (norms * norms.T)
    a1 = jnp.where(cos > high, jnp.ones_like(adj), adj)
    a2 = jnp.where(cos < low, jnp.zeros_like(adj), a1)
    return a2 - jnp.diag(jnp.diag(a2))


if __name__ == "__main__":
    key = jax.random.PRNGKey(0)
    k1, k2 = jax.random.split(key)

    N, D = 16, 32  # N nodes, D-dim semantic features
    semantic_x = jax.random.normal(k1, (N, D), dtype=jnp.float32)
    adj_raw = jax.random.uniform(k2, (N, N), dtype=jnp.float32)
    adj = ((adj_raw + adj_raw.T) * 0.5 > 0.5).astype(jnp.float32)

    out = low_high_cosine_graph_learn(semantic_x, adj)
    out = jax.block_until_ready(out)

    ref = _reference(semantic_x, adj)
    assert out.shape == (N, N)
    assert jnp.allclose(out, ref, atol=1e-5, rtol=1e-5)

    print("KERNEL_OK")
</pallas_src>

<mosaic_0001>
module attributes {stable_mosaic.version = 11 : i64} {
  func.func @kernel(%arg0: i32, %arg1: i32, %arg2: memref<128x128xf32, #tpu.memory_space<vmem>>, %arg3: memref<128x128xf32, #tpu.memory_space<vmem>>, %arg4: memref<128x128xf32, #tpu.memory_space<vmem>>, %arg5: memref<128x128xf32, #tpu.memory_space<vmem>>) attributes {dimension_semantics = [#tpu.dimension_semantics<parallel>, #tpu.dimension_semantics<parallel>], iteration_bounds = array<i64: 1, 1>, scalar_prefetch = 0 : i64, scratch_operands = 0 : i64, tpu.core_type = #tpu.core_type<tc>, window_params = [{transform_indices = @transform_0, window_bounds = array<i64: 128, 128>}, {transform_indices = @transform_1, window_bounds = array<i64: 128, 128>}, {transform_indices = @transform_2, window_bounds = array<i64: 128, 128>}, {transform_indices = @transform_3, window_bounds = array<i64: 128, 128>}]} {
    %c0 = arith.constant 0 : index
    %c0_0 = arith.constant 0 : index
    %0 = vector.load %arg2[%c0, %c0_0] : memref<128x128xf32, #tpu.memory_space<vmem>>, vector<128x128xf32>
    %c0_1 = arith.constant 0 : index
    %c0_2 = arith.constant 0 : index
    %1 = vector.load %arg3[%c0_1, %c0_2] : memref<128x128xf32, #tpu.memory_space<vmem>>, vector<128x128xf32>
    %2 = arith.mulf %0, %0 : vector<128x128xf32>
    %cst = arith.constant dense<0.000000e+00> : vector<128xf32>
    %3 = vector.multi_reduction <add>, %2, %cst [1] : vector<128x128xf32> to vector<128xf32>
    %4 = vector.shape_cast %3 : vector<128xf32> to vector<128x1xf32>
    %cst_3 = arith.constant 1.000000e-16 : f32
    %5 = vector.broadcast %cst_3 : f32 to vector<128x1xf32>
    %6 = arith.maximumf %4, %5 : vector<128x1xf32>
    %7 = math.rsqrt %6 : vector<128x1xf32>
    %8 = arith.mulf %1, %1 : vector<128x128xf32>
    %cst_4 = arith.constant dense<0.000000e+00> : vector<128xf32>
    %9 = vector.multi_reduction <add>, %8, %cst_4 [1] : vector<128x128xf32> to vector<128xf32>
    %10 = vector.shape_cast %9 : vector<128xf32> to vector<128x1xf32>
    %cst_5 = arith.constant 1.000000e-16 : f32
    %11 = vector.broadcast %cst_5 : f32 to vector<128x1xf32>
    %12 = arith.maximumf %10, %11 : vector<128x1xf32>
    %13 = math.rsqrt %12 : vector<128x1xf32>
    %14 = vector.broadcast %7 : vector<128x1xf32> to vector<128x128xf32>
    %15 = arith.mulf %0, %14 : vector<128x128xf32>
    %16 = vector.broadcast %13 : vector<128x1xf32> to vector<128x128xf32>
    %17 = arith.mulf %1, %16 : vector<128x128xf32>
    %cst_6 = arith.constant dense<0.000000e+00> : vector<128x128xf32>
    %18 = tpu.matmul %15, %17, %cst_6 {dimension_numbers = #tpu.dot_dimension_numbers<[1], [1], [0], [0], [0, 0, 1, 0], [], []>} : vector<128x128xf32>, vector<128x128xf32>, vector<128x128xf32> -> vector<128x128xf32>
    %c0_7 = arith.constant 0 : index
    %c0_8 = arith.constant 0 : index
    %19 = vector.load %arg4[%c0_7, %c0_8] : memref<128x128xf32, #tpu.memory_space<vmem>>, vector<128x128xf32>
    %cst_9 = arith.constant 2.000000e-01 : f32
    %20 = vector.broadcast %cst_9 : f32 to vector<128x128xf32>
    %21 = arith.cmpf olt, %18, %20 : vector<128x128xf32>
    %cst_10 = arith.constant 8.000000e-01 : f32
    %22 = vector.broadcast %cst_10 : f32 to vector<128x128xf32>
    %23 = arith.cmpf ogt, %18, %22 : vector<128x128xf32>
    %cst_11 = arith.constant 1.000000e+00 : f32
    %24 = vector.broadcast %cst_11 : f32 to vector<128x128xf32>
    %25 = arith.select %23, %24, %19 : vector<128x128xi1>, vector<128x128xf32>
    %cst_12 = arith.constant 0.000000e+00 : f32
    %26 = vector.broadcast %cst_12 : f32 to vector<128x128xf32>
    %27 = arith.select %21, %26, %25 : vector<128x128xi1>, vector<128x128xf32>
    %c0_13 = arith.constant 0 : index
    %c0_14 = arith.constant 0 : index
    %28 = vector.load %arg5[%c0_13, %c0_14] : memref<128x128xf32, #tpu.memory_space<vmem>>, vector<128x128xf32>
    tpu.vector_store %arg5[%c0_13, %c0_14], %27 {strides = array<i32>} : memref<128x128xf32, #tpu.memory_space<vmem>>, vector<128x128xf32>,
    %29 = arith.cmpi eq, %arg0, %arg1 : i32
    %30 = arith.extui %29 : i1 to i32
    %c0_i32 = arith.constant 0 : i32
    %31 = arith.cmpi ne, %30, %c0_i32 : i32
    scf.if %31 {
      %32 = tpu.iota {dimensions = array<i32: 0>} : vector<128x128xi32>
      %33 = tpu.iota {dimensions = array<i32: 1>} : vector<128x128xi32>
      %34 = arith.cmpi eq, %32, %33 : vector<128x128xi32>
      %cst_15 = arith.constant 0.000000e+00 : f32
      %35 = vector.broadcast %cst_15 : f32 to vector<128x128xf32>
      %36 = arith.select %34, %35, %27 : vector<128x128xi1>, vector<128x128xf32>
      %c0_16 = arith.constant 0 : index
      %c0_17 = arith.constant 0 : index
      %37 = vector.load %arg5[%c0_16, %c0_17] : memref<128x128xf32, #tpu.memory_space<vmem>>, vector<128x128xf32>
      tpu.vector_store %arg5[%c0_16, %c0_17], %36 {strides = array<i32>} : memref<128x128xf32, #tpu.memory_space<vmem>>, vector<128x128xf32>,
    } else {
    }
    return
  }
  func.func @transform_0(%arg0: i32, %arg1: i32) -> (i32, i32) {
    %c0_i32 = arith.constant 0 : i32
    %c0_i32_0 = arith.constant 0 : i32
    return %arg0, %c0_i32 : i32, i32
  }
  func.func @transform_1(%arg0: i32, %arg1: i32) -> (i32, i32) {
    %c0_i32 = arith.constant 0 : i32
    %c0_i32_0 = arith.constant 0 : i32
    return %arg1, %c0_i32 : i32, i32
  }
  func.func @transform_2(%arg0: i32, %arg1: i32) -> (i32, i32) {
    %c0_i32 = arith.constant 0 : i32
    return %arg0, %arg1 : i32, i32
  }
  func.func @transform_3(%arg0: i32, %arg1: i32) -> (i32, i32) {
    %c0_i32 = arith.constant 0 : i32
    return %arg0, %arg1 : i32, i32
  }
}

</mosaic_0001>

<bundles_post_ra>
// kernel: tpu_custom_call.1
= control target key start
LH: loop header
LB: loop body
LE: loop exit
PB: predicated region body
PF: predicated region fallthrough
CT: control target
= control target key end

     0   :  { %8 = vsyncpa [#allocation3], 0  ;;  %s1273_s0 = inlined_call_operand.hbm [shape: f32[128,128], index: 0, kind: input, shape index: {}]   ;;  %s1274_s1 = inlined_call_operand.hbm [shape: f32[128,128], index: 1, kind: input, shape index: {}]   ;;  %s1275_s2 = inlined_call_operand.hbm [shape: f32[128,128], index: 2, kind: input, shape index: {}]   ;;  %s1276_s3 = inlined_call_operand.hbm [shape: f32[128,128], index: 3, kind: output, shape index: {}]  }
   0x1   :  { %9 = vsyncpa [#allocation6], 0 }
   0x2   :  { %10 = vsyncpa [#allocation4], 0  ;;  %s910_s12 = smov [#allocation5]   ;;  %s911_s14 = smov [#allocation2]  }
   0x3   :  { %s28_s13 = sshll.u32 %s910_s12, 4  ;;  %s16_s15 = sshll.u32 %s911_s14, 4  ;;  %s29_s13 = int_to_ptr.vmem [resolvable:$true] %s28_s13  ;;  %s936_s15 = int_to_ptr.vmem [resolvable:$true] %s16_s15 }
   0x4   :  { %s816_s18 = scalar_lea.hbm %s1274_s1, 2048 }
   0x5   :  { %p817_p0 = scmp.ne.s32.totalorder %s1274_s1, %s816_s18  ;;  %p820_p1 = scmp.lt.u32.totalorder %s816_s18, %s1274_s1 }
   0x7   :  { %p822_p2 = pnand %p820_p1, %p817_p0 }
   0x9   :  { %825 = shalt.err (!%p822_p2)
}
   0xa   :  { %s826_s23 = scalar_lea.vmem %s29_s13, 2048  ;;  %p831_p4 = scmp.lt.s32.totalorder %s29_s13, %s29_s13 }
   0xb   :  { %p827_p3 = scmp.ne.s32.totalorder %s29_s13, %s826_s23  ;;  %p832_p5 = scmp.lt.s32.totalorder %s826_s23, %s826_s23 }
   0xd   :  { %p833_p6 = por %p832_p5, %p831_p4 }
   0xf   :  { %p834_p7 = pnand %p833_p6, %p827_p3 }
  0x11   :  { %837 = shalt.err (!%p834_p7)
}
  0x12   :  { %s912_s24 = smov 128   ;;  %s913_s25 = smov 8  }
  0x13   :  { %34 = dma.hbm_to_vmem [thread:$0]  %s1274_s1, 2048, %s29_s13, [#allocation6], %s912_s24, %s912_s24, %s913_s25  }
  0x14   :  { %s838_s30 = scalar_lea.hbm %s1273_s0, 2048 }
  0x15   :  { %p839_p8 = scmp.ne.s32.totalorder %s1273_s0, %s838_s30  ;;  %p842_p9 = scmp.lt.u32.totalorder %s838_s30, %s1273_s0 }
  0x17   :  { %p844_p10 = pnand %p842_p9, %p839_p8 }
  0x19   :  { %847 = shalt.err (!%p844_p10)
}
  0x1a   :  { %s848_s8 = scalar_lea.vmem %s936_s15, 2048  ;;  %p853_p12 = scmp.lt.s32.totalorder %s936_s15, %s936_s15 }
  0x1b   :  { %p849_p11 = scmp.ne.s32.totalorder %s936_s15, %s848_s8  ;;  %p854_p13 = scmp.lt.s32.totalorder %s848_s8, %s848_s8 }
  0x1d   :  { %p855_p0 = por %p854_p13, %p853_p12 }
  0x1f   :  { %p856_p1 = pnand %p855_p0, %p849_p11 }
  0x21   :  { %859 = shalt.err (!%p856_p1)
}
  0x22   :  { %22 = dma.hbm_to_vmem [thread:$0]  %s1273_s0, 2048, %s936_s15, [#allocation3], %s912_s24, %s912_s24, %s913_s25  }
  0x23   :  { %s914_s10 = smov [#allocation7]   ;;  %s860_s14 = scalar_lea.hbm %s1275_s2, 2048 }
  0x24   :  { %s40_s11 = sshll.u32 %s914_s10, 4  ;;  %p861_p2 = scmp.ne.s32.totalorder %s1275_s2, %s860_s14  ;;  %s41_s11 = int_to_ptr.vmem [resolvable:$true] %s40_s11 }
  0x25   :  { %p864_p3 = scmp.lt.u32.totalorder %s860_s14, %s1275_s2 }
  0x27   :  { %p866_p4 = pnand %p864_p3, %p861_p2 }
  0x29   :  { %869 = shalt.err (!%p866_p4)
}
  0x2a   :  { %s870_s20 = scalar_lea.vmem %s41_s11, 2048  ;;  %p875_p6 = scmp.lt.s32.totalorder %s41_s11, %s41_s11 }
  0x2b   :  { %p871_p5 = scmp.ne.s32.totalorder %s41_s11, %s870_s20  ;;  %p876_p7 = scmp.lt.s32.totalorder %s870_s20, %s870_s20 }
  0x2d   :  { %p877_p8 = por %p876_p7, %p875_p6 }
  0x2f   :  { %p878_p9 = pnand %p877_p8, %p871_p5 }
  0x31   :  { %881 = shalt.err (!%p878_p9)
}
  0x32   :  { %46 = dma.hbm_to_vmem [thread:$0]  %s1275_s2, 2048, %s41_s11, [#allocation6], %s912_s24, %s912_s24, %s913_s25  }
  0x33   :  { %904 = dma.done.wait [#allocation3], 2048  }
  0x34   :  { %905 = vsyncadd [#allocation3], 4294965248 }
  0x35   :  { %906 = dma.done.wait [#allocation6], 4096  }
  0x36   :  { %907 = vsyncadd [#allocation6], 4294963200  ;;  %v988_v0 = vld [vmem:[#allocation5] sm:$0xff]  ;;  %v990_v1 = vld [vmem:[#allocation5 + $0x10] sm:$0xff]  ;;  %s915_s2 = smov [#allocation8]  }
  0x37   :  { %v992_v2 = vld [vmem:[#allocation5 + $0x8] sm:$0xff]  ;;  %v168_v3 = vmul.f32 %v988_v0, %v988_v0  ;;  %v170_v4 = vmul.f32 %v990_v1, %v990_v1  ;;  %v998_v5 = vld [vmem:[#allocation5 + $0x18] sm:$0xff]  ;;  %v1006_v9 = vld [vmem:[#allocation5 + $0x20] sm:$0xff]  ;;  %s597_s21 = sshll.u32 %s915_s2, 4  ;;  %s598_s21 = int_to_ptr.vmem [resolvable:$true] %s597_s21 }
  0x38   :  { %v169_v6 = vmul.f32 %v992_v2, %v992_v2  ;;  %v171_v7 = vmul.f32 %v998_v5, %v998_v5  ;;  %v1004_v8 = vld [vmem:[#allocation5 + $0x28] sm:$0xff]  ;;  %v172_v11 = vmul.f32 %v1006_v9, %v1006_v9  ;;  %v1012_v12 = vld [vmem:[#allocation5 + $0x38] sm:$0xff]  ;;  %v1014_v13 = vld [vmem:[#allocation5 + $0x30] sm:$0xff]  ;;  %s882_s22 = scalar_lea.vmem %s598_s21, 2048  ;;  %p887_p11 = scmp.lt.s32.totalorder %s598_s21, %s598_s21 }
  0x39   :  { %184 = vadd.xlane.f32.xlu0 %v168_v3  ;;  %188 = vadd.xlane.f32.xlu1 %v170_v4  ;;  %v173_v10 = vmul.f32 %v1004_v8, %v1004_v8  ;;  %v175_v14 = vmul.f32 %v1012_v12, %v1012_v12  ;;  %v174_v15 = vmul.f32 %v1014_v13, %v1014_v13  ;;  %v1020_v16 = vld [vmem:[#allocation5 + $0x48] sm:$0xff]  ;;  %v1022_v17 = vld [vmem:[#allocation5 + $0x40] sm:$0xff]  ;;  %v1028_v20 = vld [vmem:[#allocation5 + $0x58] sm:$0xff]  ;;  %p883_p10 = scmp.ne.s32.totalorder %s598_s21, %s882_s22  ;;  %p888_p12 = scmp.lt.s32.totalorder %s882_s22, %s882_s22 }
  0x3a   :  { %v177_v18 = vmul.f32 %v1020_v16, %v1020_v16  ;;  %v176_v19 = vmul.f32 %v1022_v17, %v1022_v17  ;;  %v1030_v21 = vld [vmem:[#allocation5 + $0x50] sm:$0xff]  ;;  %v179_v22 = vmul.f32 %v1028_v20, %v1028_v20  ;;  %v1036_v24 = vld [vmem:[#allocation5 + $0x68] sm:$0xff]  ;;  %v1038_v25 = vld [vmem:[#allocation5 + $0x60] sm:$0xff] }
  0x3b   :  { %v178_v23 = vmul.f32 %v1030_v21, %v1030_v21  ;;  %v181_v26 = vmul.f32 %v1036_v24, %v1036_v24  ;;  %v180_v27 = vmul.f32 %v1038_v25, %v1038_v25  ;;  %v1044_v28 = vld [vmem:[#allocation5 + $0x78] sm:$0xff]  ;;  %v1046_v29 = vld [vmem:[#allocation5 + $0x70] sm:$0xff]  ;;  %v1052_v32 = vld [vmem:[#allocation2 + $0x40] sm:$0xff]  ;;  %p889_p13 = por %p888_p12, %p887_p11 }
  0x3c   :  { %v183_v30 = vmul.f32 %v1044_v28, %v1044_v28  ;;  %v182_v31 = vmul.f32 %v1046_v29, %v1046_v29  ;;  %v1054_v33 = vld [vmem:[#allocation2] sm:$0xff]  ;;  %v96_v34 = vmul.f32 %v1052_v32, %v1052_v32  ;;  %v1060_v36 = vld [vmem:[#allocation2 + $0x48] sm:$0xff]  ;;  %v1068_v40 = vld [vmem:[#allocation2 + $0x50] sm:$0xff] }
  0x3d   :  { %186 = vadd.xlane.f32.xlu0 %v169_v6  ;;  %190 = vadd.xlane.f32.xlu1 %v171_v7  ;;  %v88_v35 = vmul.f32 %v1054_v33, %v1054_v33  ;;  %v1062_v37 = vld [vmem:[#allocation2 + $0x8] sm:$0xff]  ;;  %v97_v38 = vmul.f32 %v1060_v36, %v1060_v36  ;;  %v1070_v41 = vld [vmem:[#allocation2 + $0x10] sm:$0xff]  ;;  %v98_v42 = vmul.f32 %v1068_v40, %v1068_v40  ;;  %v1076_v44 = vld [vmem:[#allocation2 + $0x58] sm:$0xff]  ;;  %p890_p0 = pnand %p889_p13, %p883_p10 }
  0x3e   :  { %v89_v39 = vmul.f32 %v1062_v37, %v1062_v37  ;;  %v90_v43 = vmul.f32 %v1070_v41, %v1070_v41  ;;  %v1078_v45 = vld [vmem:[#allocation2 + $0x18] sm:$0xff]  ;;  %v99_v46 = vmul.f32 %v1076_v44, %v1076_v44  ;;  %v1084_v48 = vld [vmem:[#allocation2 + $0x60] sm:$0xff]  ;;  %v1092_v52 = vld [vmem:[#allocation2 + $0x68] sm:$0xff] }
  0x3f   :  { %v91_v47 = vmul.f32 %v1078_v45, %v1078_v45  ;;  %v1086_v49 = vld [vmem:[#allocation2 + $0x20] sm:$0xff]  ;;  %v100_v50 = vmul.f32 %v1084_v48, %v1084_v48  ;;  %v1094_v53 = vld [vmem:[#allocation2 + $0x28] sm:$0xff]  ;;  %v101_v54 = vmul.f32 %v1092_v52, %v1092_v52  ;;  %v1100_v56 = vld [vmem:[#allocation2 + $0x70] sm:$0xff] }
  0x40   :  { %v92_v51 = vmul.f32 %v1086_v49, %v1086_v49  ;;  %v93_v55 = vmul.f32 %v1094_v53, %v1094_v53  ;;  %v1102_v57 = vld [vmem:[#allocation2 + $0x30] sm:$0xff]  ;;  %v102_v58 = vmul.f32 %v1100_v56, %v1100_v56  ;;  %v1108_v60 = vld [vmem:[#allocation2 + $0x78] sm:$0xff] }
  0x41   :  { %194 = vadd.xlane.f32.xlu1 %v173_v10  ;;  %192 = vadd.xlane.f32.xlu0 %v172_v11  ;;  %v94_v59 = vmul.f32 %v1102_v57, %v1102_v57  ;;  %v1110_v61 = vld [vmem:[#allocation2 + $0x38] sm:$0xff]  ;;  %v103_v62 = vmul.f32 %v1108_v60, %v1108_v60 }
  0x42   :  { %v95_v63 = vmul.f32 %v1110_v61, %v1110_v61 }
  0x45   :  { %198 = vadd.xlane.f32.xlu1 %v175_v14  ;;  %196 = vadd.xlane.f32.xlu0 %v174_v15 }
  0x49   :  { %202 = vadd.xlane.f32.xlu1 %v177_v18  ;;  %200 = vadd.xlane.f32.xlu0 %v176_v19 }
  0x4d   :  { %206 = vadd.xlane.f32.xlu1 %v179_v22  ;;  %204 = vadd.xlane.f32.xlu0 %v178_v23 }
  0x51   :  { %210 = vadd.xlane.f32.xlu1 %v181_v26  ;;  %208 = vadd.xlane.f32.xlu0 %v180_v27 }
  0x55   :  { %214 = vadd.xlane.f32.xlu1 %v183_v30  ;;  %212 = vadd.xlane.f32.xlu0 %v182_v31 }
  0x59   :  { %120 = vadd.xlane.f32.xlu1 %v96_v34  ;;  %104 = vadd.xlane.f32.xlu0 %v88_v35 }
  0x5d   :  { %122 = vadd.xlane.f32.xlu1 %v97_v38  ;;  %106 = vadd.xlane.f32.xlu0 %v89_v39 }
  0x61   :  { %124 = vadd.xlane.f32.xlu1 %v98_v42  ;;  %108 = vadd.xlane.f32.xlu0 %v90_v43 }
  0x65   :  { %126 = vadd.xlane.f32.xlu1 %v99_v46  ;;  %110 = vadd.xlane.f32.xlu0 %v91_v47 }
  0x69   :  { %128 = vadd.xlane.f32.xlu1 %v100_v50  ;;  %112 = vadd.xlane.f32.xlu0 %v92_v51 }
  0x6d   :  { %130 = vadd.xlane.f32.xlu1 %v101_v54  ;;  %114 = vadd.xlane.f32.xlu0 %v93_v55 }
  0x71   :  { %132 = vadd.xlane.f32.xlu1 %v102_v58  ;;  %116 = vadd.xlane.f32.xlu0 %v94_v59 }
  0x75   :  { %134 = vadd.xlane.f32.xlu1 %v103_v62  ;;  %118 = vadd.xlane.f32.xlu0 %v95_v63 }
  0xc6   :  { %v185_v3 = vpop.xlane.xlu0 %184  ;;  %v189_v4 = vpop.xlane.xlu1 %188 }
  0xc7   :  { %v216_v6 = vmax.f32 %v185_v3, 1e-16  ;;  %v218_v7 = vmax.f32 %v189_v4, 1e-16 }
  0xc9   :  { %752 = vrsqrt.f32 %v218_v7 }
  0xca   :  { %v187_v10 = vpop.xlane.xlu0 %186  ;;  %v191_v11 = vpop.xlane.xlu1 %190  ;;  %754 = vrsqrt.f32 %v216_v6 }
  0xcb   :  { %v217_v14 = vmax.f32 %v187_v10, 1e-16  ;;  %v219_v15 = vmax.f32 %v191_v11, 1e-16 }
  0xcd   :  { %756 = vrsqrt.f32 %v217_v14 }
  0xce   :  { %758 = vrsqrt.f32 %v219_v15  ;;  %v195_v18 = vpop.xlane.xlu1 %194  ;;  %v193_v19 = vpop.xlane.xlu0 %192 }
  0xcf   :  { %v221_v22 = vmax.f32 %v195_v18, 1e-16  ;;  %v220_v23 = vmax.f32 %v193_v19, 1e-16 }
  0xd1   :  { %760 = vrsqrt.f32 %v221_v22 }
  0xd2   :  { %762 = vrsqrt.f32 %v220_v23  ;;  %v199_v26 = vpop.xlane.xlu1 %198  ;;  %v197_v27 = vpop.xlane.xlu0 %196 }
  0xd3   :  { %v753_v30 = vpop.eup %752  ;;  %v223_v31 = vmax.f32 %v199_v26, 1e-16  ;;  %v222_v35 = vmax.f32 %v197_v27, 1e-16 }
  0xd4   :  { %v755_v34 = vpop.eup %754  ;;  %v266_v43 = vmul.f32 %v753_v30, %v990_v1 }
  0xd5   :  { %v264_v47 = vmul.f32 %v755_v34, %v988_v0  ;;  %764 = vrsqrt.f32 %v223_v31 }
  0xd6   :  { %v203_v38 = vpop.xlane.xlu1 %202  ;;  %v201_v39 = vpop.xlane.xlu0 %200  ;;  %766 = vrsqrt.f32 %v222_v35 }
  0xd7   :  { %v757_v42 = vpop.eup %756  ;;  %v225_v3 = vmax.f32 %v203_v38, 1e-16  ;;  %v224_v1 = vmax.f32 %v201_v39, 1e-16 }
  0xd8   :  { %v759_v46 = vpop.eup %758  ;;  %v265_v50 = vmul.f32 %v757_v42, %v992_v2 }
  0xd9   :  { %v267_v51 = vmul.f32 %v759_v46, %v998_v5  ;;  %768 = vrsqrt.f32 %v225_v3 }
  0xda   :  { %v698_v54 = vpack.c.bf16 %v265_v50, %v264_v47  ;;  %v207_v55 = vpop.xlane.xlu1 %206  ;;  %v205_v58 = vpop.xlane.xlu0 %204  ;;  %770 = vrsqrt.f32 %v224_v1 }
  0xdb   :  { %v761_v59 = vpop.eup %760  ;;  %v702_v62 = vpack.c.bf16 %v267_v51, %v266_v43  ;;  %v227_v15 = vmax.f32 %v207_v55, 1e-16  ;;  %v226_v18 = vmax.f32 %v205_v58, 1e-16 }
  0xdc   :  { %v763_v63 = vpop.eup %762  ;;  %699 = vmatprep.subr.bf16.mxu0 %v698_v54  ;;  %730 = vmatprep.subr.bf16.mxu1 %v698_v54  ;;  %v269_v2 = vmul.f32 %v761_v59, %v1004_v8 }
  0xdd   :  { %701 = vmatpush3.bf16.xpose.msra.mxu0 %v698_v54  ;;  %738 = vmatpush3.bf16.xpose.msra.mxu1 %v698_v54  ;;  %v268_v0 = vmul.f32 %v763_v63, %v1006_v9  ;;  %772 = vrsqrt.f32 %v227_v15 }
  0xde   :  { %703 = vmatprep.subr.bf16.mxu0 %v702_v62  ;;  %731 = vmatprep.subr.bf16.mxu1 %v702_v62  ;;  %v211_v5 = vpop.xlane.xlu1 %210  ;;  %v209_v4 = vpop.xlane.xlu0 %208  ;;  %774 = vrsqrt.f32 %v226_v18 }
  0xdf   :  { %v765_v6 = vpop.eup %764  ;;  %v706_v7 = vpack.c.bf16 %v269_v2, %v268_v0  ;;  %v229_v35 = vmax.f32 %v211_v5, 1e-16 }
  0xe0   :  { %v767_v14 = vpop.eup %766  ;;  %v271_v9 = vmul.f32 %v765_v6, %v1012_v12 }
  0xe1   :  { %v270_v19 = vmul.f32 %v767_v14, %v1014_v13  ;;  %v228_v13 = vmax.f32 %v209_v4, 1e-16 }
  0xe2   :  { %v215_v10 = vpop.xlane.xlu1 %214  ;;  %v213_v11 = vpop.xlane.xlu0 %212 }
  0xe3   :  { %v769_v27 = vpop.eup %768  ;;  %v710_v30 = vpack.c.bf16 %v271_v9, %v270_v19  ;;  %v231_v59 = vmax.f32 %v215_v10, 1e-16 }
  0xe4   :  { %v771_v31 = vpop.eup %770  ;;  %v273_v39 = vmul.f32 %v769_v27, %v1020_v16 }
  0xe5   :  { %705 = vmatpush3.bf16.xpose.msra.mxu0 %v702_v62  ;;  %739 = vmatpush3.bf16.xpose.msra.mxu1 %v702_v62  ;;  %v272_v12 = vmul.f32 %v771_v31, %v1022_v17  ;;  %v230_v62 = vmax.f32 %v213_v11, 1e-16 }
  0xe6   :  { %707 = vmatprep.subr.bf16.mxu0 %v706_v7  ;;  %732 = vmatprep.subr.bf16.mxu1 %v706_v7  ;;  %v121_v8 = vpop.xlane.xlu1 %120  ;;  %v105_v22 = vpop.xlane.xlu0 %104 }
  0xe7   :  { %v144_v23 = vmax.f32 %v121_v8, 1e-16  ;;  %v136_v26 = vmax.f32 %v105_v22, 1e-16  ;;  %v773_v42 = vpop.eup %772  ;;  %v714_v47 = vpack.c.bf16 %v273_v39, %v272_v12 }
  0xe8   :  { %v775_v46 = vpop.eup %774  ;;  %v275_v17 = vmul.f32 %v773_v42, %v1028_v20 }
  0xe9   :  { %776 = vrsqrt.f32 %v144_v23  ;;  %v274_v16 = vmul.f32 %v775_v46, %v1030_v21 }
  0xea   :  { %778 = vrsqrt.f32 %v136_v26  ;;  %v123_v34 = vpop.xlane.xlu1 %122  ;;  %v1124_v38 = vpop.xlane.xlu0 %106 }
  0xeb   :  { %780 = vrsqrt.f32 %v229_v35  ;;  %v718_v0 = vpack.c.bf16 %v275_v17, %v274_v16  ;;  %v145_v11 = vmax.f32 %v123_v34, 1e-16  ;;  %v137_v14 = vmax.f32 %v1124_v38, 1e-16 }
  0xec   :  { %782 = vrsqrt.f32 %v228_v13 }
  0xed   :  { %709 = vmatpush3.bf16.xpose.msra.mxu0 %v706_v7  ;;  %740 = vmatpush3.bf16.xpose.msra.mxu1 %v706_v7  ;;  %784 = vrsqrt.f32 %v231_v59 }
  0xee   :  { %711 = vmatprep.subr.bf16.mxu0 %v710_v30  ;;  %733 = vmatprep.subr.bf16.mxu1 %v710_v30  ;;  %v125_v43 = vpop.xlane.xlu1 %124  ;;  %v109_v50 = vpop.xlane.xlu0 %108  ;;  %786 = vrsqrt.f32 %v230_v62 }
  0xef   :  { %v146_v15 = vmax.f32 %v125_v43, 1e-16  ;;  %v138_v19 = vmax.f32 %v109_v50, 1e-16  ;;  %788 = vrsqrt.f32 %v145_v11 }
  0xf0   :  { %790 = vrsqrt.f32 %v137_v14 }
  0xf1   :  { %792 = vrsqrt.f32 %v146_v15 }
  0xf2   :  { %v127_v63 = vpop.xlane.xlu1 %126  ;;  %v111_v3 = vpop.xlane.xlu0 %110  ;;  %794 = vrsqrt.f32 %v138_v19 }
  0xf3   :  { %v777_v51 = vpop.eup %776  ;;  %v147_v9 = vmax.f32 %v127_v63, 1e-16  ;;  %v139_v22 = vmax.f32 %v111_v3, 1e-16 }
  0xf4   :  { %v779_v54 = vpop.eup %778  ;;  %v256_v55 = vmul.f32 %v777_v51, %v1052_v32 }
  0xf5   :  { %713 = vmatpush3.bf16.xpose.msra.mxu0 %v710_v30  ;;  %741 = vmatpush3.bf16.xpose.msra.mxu1 %v710_v30  ;;  %v248_v58 = vmul.f32 %v779_v54, %v1054_v33  ;;  %v781_v1 = vpop.eup %780  ;;  %796 = vrsqrt.f32 %v147_v9 }
  0xf6   :  { %715 = vmatprep.subr.bf16.mxu0 %v714_v47  ;;  %734 = vmatprep.subr.bf16.mxu1 %v714_v47  ;;  %v783_v32 = vpop.eup %782  ;;  %v129_v33 = vpop.xlane.xlu1 %128  ;;  %v277_v21 = vmul.f32 %v781_v1, %v1036_v24  ;;  %798 = vrsqrt.f32 %v139_v22 }
  0xf7   :  { %686 = vmatprep.mubr.f32.mxu1 %v256_v55  ;;  %674 = vmatprep.mubr.f32.mxu0 %v248_v58  ;;  %v276_v2 = vmul.f32 %v783_v32, %v1038_v25  ;;  %v113_v20 = vpop.xlane.xlu0 %112  ;;  %v785_v6 = vpop.eup %784  ;;  %v148_v23 = vmax.f32 %v129_v33, 1e-16 }
  0xf8   :  { %v787_v10 = vpop.eup %786  ;;  %v279_v25 = vmul.f32 %v785_v6, %v1044_v28  ;;  %v140_v27 = vmax.f32 %v113_v20, 1e-16  ;;  %v425_v6 = vld [vmem:[#allocation7] sm:$0xff] }
  0xf9   :  { %v722_v5 = vpack.c.bf16 %v277_v21, %v276_v2  ;;  %v278_v18 = vmul.f32 %v787_v10, %v1046_v29  ;;  %800 = vrsqrt.f32 %v148_v23  ;;  %v789_v12 = vpop.eup %788 }
  0xfa   :  { %v131_v4 = vpop.xlane.xlu1 %130  ;;  %802 = vrsqrt.f32 %v140_v27  ;;  %v791_v39 = vpop.eup %790  ;;  %v257_v54 = vmul.f32 %v789_v12, %v1060_v36  ;;  %v428_v27 = vld [vmem:[#allocation7 + $0x18] sm:$0xff] }
  0xfb   :  { %v115_v7 = vpop.xlane.xlu0 %114  ;;  %v726_v26 = vpack.c.bf16 %v279_v25, %v278_v18  ;;  %v149_v29 = vmax.f32 %v131_v4, 1e-16  ;;  %v793_v42 = vpop.eup %792  ;;  %v249_v51 = vmul.f32 %v791_v39, %v1062_v37  ;;  %v434_v4 = vld [vmem:[#allocation7 + $0x48] sm:$0xff]  ;;  %v427_v39 = vld [vmem:[#allocation7 + $0x10] sm:$0xff] }
  0xfc   :  { %v141_v35 = vmax.f32 %v115_v7, 1e-16  ;;  %v795_v43 = vpop.eup %794  ;;  %v258_v59 = vmul.f32 %v793_v42, %v1068_v40 }
  0xfd   :  { %717 = vmatpush3.bf16.xpose.msra.mxu0 %v714_v47  ;;  %742 = vmatpush3.bf16.xpose.msra.mxu1 %v714_v47  ;;  %804 = vrsqrt.f32 %v149_v29  ;;  %v250_v58 = vmul.f32 %v795_v43, %v1070_v41 }
  0xfe   :  { %719 = vmatprep.subr.bf16.mxu0 %v718_v0  ;;  %735 = vmatprep.subr.bf16.mxu1 %v718_v0  ;;  %v133_v24 = vpop.xlane.xlu1 %132 }
  0xff   :  { %v117_v8 = vpop.xlane.xlu0 %116  ;;  %v150_v28 = vmax.f32 %v133_v24, 1e-16  ;;  %v797_v46 = vpop.eup %796 }
 0x100   :  { %v142_v31 = vmax.f32 %v117_v8, 1e-16  ;;  %v799_v47 = vpop.eup %798  ;;  %v259_v3 = vmul.f32 %v797_v46, %v1076_v44  ;;  %v433_v8 = vld [vmem:[#allocation7 + $0x40] sm:$0xff] }
 0x101   :  { %806 = vrsqrt.f32 %v150_v28  ;;  %v251_v63 = vmul.f32 %v799_v47, %v1078_v45 }
 0x102   :  { %v135_v30 = vpop.xlane.xlu1 %134  ;;  %808 = vrsqrt.f32 %v142_v31 }
 0x103   :  { %v119_v34 = vpop.xlane.xlu0 %118  ;;  %v151_v38 = vmax.f32 %v135_v30, 1e-16  ;;  %810 = vrsqrt.f32 %v141_v35  ;;  %v801_v50 = vpop.eup %800  ;;  %v436_v30 = vld [vmem:[#allocation7 + $0x58] sm:$0xff] }
 0x104   :  { %v143_v13 = vmax.f32 %v119_v34, 1e-16  ;;  %v803_v55 = vpop.eup %802  ;;  %v260_v36 = vmul.f32 %v801_v50, %v1084_v48  ;;  %v435_v50 = vld [vmem:[#allocation7 + $0x50] sm:$0xff] }
 0x105   :  { %721 = vmatpush3.bf16.xpose.msra.mxu0 %v718_v0  ;;  %743 = vmatpush3.bf16.xpose.msra.mxu1 %v718_v0  ;;  %812 = vrsqrt.f32 %v151_v38  ;;  %v252_v37 = vmul.f32 %v803_v55, %v1086_v49  ;;  %v525_v49 = vlaneseq  ;;  %v430_v55 = vld [vmem:[#allocation7 + $0x28] sm:$0xff] }
 0x106   :  { %723 = vmatprep.subr.bf16.mxu0 %v722_v5  ;;  %736 = vmatprep.subr.bf16.mxu1 %v722_v5  ;;  %814 = vrsqrt.f32 %v143_v13 }
 0x107   :  { %v805_v16 = vpop.eup %804  ;;  %v526_v2 = vshrl.u32 %v525_v49, 7 }
 0x108   :  { %v261_v45 = vmul.f32 %v805_v16, %v1092_v52 }
 0x109   :  { %v527_v21 = vadd.s32 8, %v526_v2  ;;  %v1153_v20 = vadd.s32 64, %v526_v2  ;;  %v1160_v52 = vadd.s32 88, %v526_v2  ;;  %v1170_v7 = vadd.s32 40, %v526_v2 }
 0x10a   :  { %v1172_v10 = vadd.s32 104, %v526_v2  ;;  %v1174_v11 = vadd.s32 32, %v526_v2  ;;  %v1176_v14 = vadd.s32 96, %v526_v2  ;;  %v1178_v25 = vadd.s32 56, %v526_v2 }
 0x10b   :  { %v807_v17 = vpop.eup %806  ;;  %v1180_v19 = vadd.s32 120, %v526_v2  ;;  %v1182_v24 = vadd.s32 48, %v526_v2  ;;  %v1184_v9 = vadd.s32 112, %v526_v2 }
 0x10c   :  { %v809_v62 = vpop.eup %808  ;;  %v262_v32 = vmul.f32 %v807_v17, %v1100_v56  ;;  %v535_v56 = vadd.s32 72, %v526_v2 }
 0x10d   :  { %725 = vmatpush3.bf16.xpose.msra.mxu0 %v722_v5  ;;  %744 = vmatpush3.bf16.xpose.msra.mxu1 %v722_v5  ;;  %v811_v1 = vpop.eup %810  ;;  %v254_v41 = vmul.f32 %v809_v62, %v1102_v57  ;;  %v1151_v57 = vand.u32 127, %v525_v49  ;;  %v1168_v5 = vadd.s32 80, %v526_v2 }
 0x10e   :  { %727 = vmatprep.subr.bf16.mxu0 %v726_v26  ;;  %737 = vmatprep.subr.bf16.mxu1 %v726_v26  ;;  %v253_v33 = vmul.f32 %v811_v1, %v1094_v53  ;;  %v1155_v53 = vadd.s32 24, %v526_v2 }
 0x10f   :  { %v813_v0 = vpop.eup %812  ;;  %vm545_vm0 = vcmp.eq.s32.totalorder %v527_v21, %v1151_v57  ;;  %vm553_vm1 = vcmp.eq.s32.totalorder %v535_v56, %v1151_v57  ;;  %vm544_vm2 = vcmp.eq.s32.totalorder %v526_v2, %v1151_v57  ;;  %vm552_vm3 = vcmp.eq.s32.totalorder %v1153_v20, %v1151_v57  ;;  %v432_v56 = vld [vmem:[#allocation7 + $0x38] sm:$0xff] }
 0x110   :  { %v815_v40 = vpop.eup %814  ;;  %v263_v48 = vmul.f32 %v813_v0, %v1108_v60  ;;  %v426_v60 = vld [vmem:[#allocation7 + $0x8] sm:$0xff]  ;;  %vm547_vm4 = vcmp.eq.s32.totalorder %v1155_v53, %v1151_v57  ;;  %vm555_vm8 = vcmp.eq.s32.totalorder %v1160_v52, %v1151_v57  ;;  %vm554_vm11 = vcmp.eq.s32.totalorder %v1168_v5, %v1151_v57 }
 0x111   :  { %v255_v44 = vmul.f32 %v815_v40, %v1110_v61  ;;  %v1166_v61 = vadd.s32 16, %v526_v2  ;;  %vm549_vm14 = vcmp.eq.s32.totalorder %v1170_v7, %v1151_v57  ;;  %v429_v40 = vld [vmem:[#allocation7 + $0x20] sm:$0xff] }
 0x113   :  { %vm546_vm10 = vcmp.eq.s32.totalorder %v1166_v61, %v1151_v57  ;;  %v440_v61 = vld [vmem:[#allocation7 + $0x78] sm:$0xff] }
 0x115   :  { %729 = vmatpush3.bf16.xpose.msra.mxu0 %v726_v26  ;;  %745 = vmatpush3.bf16.xpose.msra.mxu1 %v726_v26 }
 0x11c   :  { %675 = vmatmul.mubr.f32.vlgmr.msra.gmra.mrb[0].mxu0 %v249_v51  ;;  %687 = vmatmul.mubr.f32.vlgmr.msra.gmra.mrb[0].mxu1 %v257_v54 }
 0x11d   :  { %677 = vmatprep.mubr.f32.mxu0 %v250_v58  ;;  %689 = vmatprep.mubr.f32.mxu1 %v258_v59 }
 0x120   :  { %678 = vmatmul.mubr.f32.gmra.mrb[2].mxu0 %v251_v63  ;;  %690 = vmatmul.mubr.f32.gmra.mrb[2].mxu1 %v259_v3  ;;  %v438_v3 = vld [vmem:[#allocation7 + $0x68] sm:$0xff] }
 0x121   :  { %680 = vmatprep.mubr.f32.mxu0 %v252_v37  ;;  %692 = vmatprep.mubr.f32.mxu1 %v260_v36 }
 0x124   :  { %681 = vmatmul.mubr.f32.gmra.mrb[4].mxu0 %v253_v33  ;;  %693 = vmatmul.mubr.f32.gmra.mrb[4].mxu1 %v261_v45  ;;  %v437_v33 = vld [vmem:[#allocation7 + $0x60] sm:$0xff] }
 0x125   :  { %683 = vmatprep.mubr.f32.mxu0 %v254_v41  ;;  %695 = vmatprep.mubr.f32.mxu1 %v262_v32 }
 0x128   :  { %684 = vmatmul.mubr.f32.gmra.mrb[6].mxu0 %v255_v44  ;;  %696 = vmatmul.mubr.f32.gmra.mrb[6].mxu1 %v263_v48 }
 0x1ef   :  { %v676_v15 = vpop.f32.mrb[0].mxu0  ;;  %v688_v18 = vpop.f32.mrb[0].mxu1 }
 0x1f0   :  { %vm442_vm5 = vcmp.lt.f32.partialorder %v676_v15, 0.2  ;;  %vm458_vm6 = vcmp.gt.f32.partialorder %v676_v15, 0.8  ;;  %vm450_vm7 = vcmp.lt.f32.partialorder %v688_v18, 0.2 }
 0x1f1   :  { %v474_v22 = vsel %vm458_vm6, 1.0, %v426_v60  ;;  %vm466_vm9 = vcmp.gt.f32.partialorder %v688_v18, 0.8  ;;  %v346_v23 = vpop.f32.mrb[1].mxu0  ;;  %v386_v26 = vpop.f32.mrb[1].mxu1 }
 0x1f2   :  { %v490_v29 = vsel %vm442_vm5, 0.0, %v474_v22  ;;  %v482_v28 = vsel %vm466_vm9, 1.0, %v434_v4  ;;  %vm441_vm12 = vcmp.lt.f32.partialorder %v346_v23, 0.2  ;;  %vm457_vm13 = vcmp.gt.f32.partialorder %v346_v23, 0.8 }
 0x1f3   :  { %v561_v31 = vsel %vm545_vm0, 0.0, %v490_v29  ;;  %v498_v34 = vsel %vm450_vm7, 0.0, %v482_v28  ;;  %v473_v35 = vsel %vm457_vm13, 1.0, %v425_v6  ;;  %vm449_vm15 = vcmp.lt.f32.partialorder %v386_v26, 0.2  ;;  %v679_v38 = vpop.f32.mrb[2].mxu0 }
 0x1f4   :  { %577 = vst [vmem:[#allocation8 + $0x8] sm:$0xff] %v561_v31  ;;  %v569_v13 = vsel %vm553_vm1, 0.0, %v498_v34  ;;  %v489_v12 = vsel %vm441_vm12, 0.0, %v473_v35  ;;  %vm465_vm5 = vcmp.gt.f32.partialorder %v386_v26, 0.8  ;;  %vm557_vm9 = vcmp.eq.s32.totalorder %v1172_v10, %v1151_v57  ;;  %v691_v46 = vpop.f32.mrb[2].mxu1 }
 0x1f5   :  { %vm444_vm6 = vcmp.lt.f32.partialorder %v679_v38, 0.2  ;;  %585 = vst [vmem:[#allocation8 + $0x48] sm:$0xff] %v569_v13  ;;  %v560_v42 = vsel %vm544_vm2, 0.0, %v489_v12  ;;  %v481_v43 = vsel %vm465_vm5, 1.0, %v433_v8  ;;  %v356_v47 = vpop.f32.mrb[3].mxu0  ;;  %vm548_vm7 = vcmp.eq.s32.totalorder %v1174_v11, %v1151_v57 }
 0x1f6   :  { %vm460_vm0 = vcmp.gt.f32.partialorder %v679_v38, 0.8  ;;  %576 = vst [vmem:[#allocation8] sm:$0xff] %v560_v42  ;;  %v497_v51 = vsel %vm449_vm15, 0.0, %v481_v43  ;;  %vm452_vm1 = vcmp.lt.f32.partialorder %v691_v46, 0.2  ;;  %vm556_vm13 = vcmp.eq.s32.totalorder %v1176_v14, %v1151_v57 }
 0x1f7   :  { %v476_v54 = vsel %vm460_vm0, 1.0, %v428_v27  ;;  %vm468_vm12 = vcmp.gt.f32.partialorder %v691_v46, 0.8  ;;  %v568_v58 = vsel %vm552_vm3, 0.0, %v497_v51  ;;  %vm443_vm2 = vcmp.lt.f32.partialorder %v356_v47, 0.2 }
 0x1f8   :  { %v492_v59 = vsel %vm444_vm6, 0.0, %v476_v54  ;;  %v484_v16 = vsel %vm468_vm12, 1.0, %v436_v30  ;;  %v396_v17 = vpop.f32.mrb[3].mxu1  ;;  %584 = vst [vmem:[#allocation8 + $0x40] sm:$0xff] %v568_v58  ;;  %vm459_vm15 = vcmp.gt.f32.partialorder %v356_v47, 0.8  ;;  %vm551_vm6 = vcmp.eq.s32.totalorder %v1178_v25, %v1151_v57 }
 0x1f9   :  { %v563_v62 = vsel %vm547_vm4, 0.0, %v492_v59  ;;  %v500_v63 = vsel %vm452_vm1, 0.0, %v484_v16  ;;  %vm451_vm5 = vcmp.lt.f32.partialorder %v396_v17, 0.2  ;;  %v475_v37 = vsel %vm459_vm15, 1.0, %v427_v39  ;;  %v682_v36 = vpop.f32.mrb[4].mxu0 }
 0x1fa   :  { %579 = vst [vmem:[#allocation8 + $0x18] sm:$0xff] %v563_v62  ;;  %v571_v1 = vsel %vm555_vm8, 0.0, %v500_v63  ;;  %vm467_vm3 = vcmp.gt.f32.partialorder %v396_v17, 0.8  ;;  %v694_v0 = vpop.f32.mrb[4].mxu1  ;;  %v491_v41 = vsel %vm443_vm2, 0.0, %v475_v37  ;;  %vm559_vm2 = vcmp.eq.s32.totalorder %v1180_v19, %v1151_v57 }
 0x1fb   :  { %587 = vst [vmem:[#allocation8 + $0x58] sm:$0xff] %v571_v1  ;;  %v483_v32 = vsel %vm467_vm3, 1.0, %v435_v50  ;;  %vm446_vm4 = vcmp.lt.f32.partialorder %v682_v36, 0.2  ;;  %vm462_vm0 = vcmp.gt.f32.partialorder %v682_v36, 0.8 }
 0x1fc   :  { %v562_v45 = vsel %vm546_vm10, 0.0, %v491_v41  ;;  %v499_v44 = vsel %vm451_vm5, 0.0, %v483_v32  ;;  %v478_v48 = vsel %vm462_vm0, 1.0, %v430_v55  ;;  %vm454_vm8 = vcmp.lt.f32.partialorder %v694_v0, 0.2  ;;  %v366_v49 = vpop.f32.mrb[5].mxu0 }
 0x1fd   :  { %578 = vst [vmem:[#allocation8 + $0x10] sm:$0xff] %v562_v45  ;;  %v570_v2 = vsel %vm554_vm11, 0.0, %v499_v44  ;;  %v494_v21 = vsel %vm446_vm4, 0.0, %v478_v48  ;;  %vm470_vm1 = vcmp.gt.f32.partialorder %v694_v0, 0.8  ;;  %v406_v52 = vpop.f32.mrb[5].mxu1  ;;  %vm550_vm4 = vcmp.eq.s32.totalorder %v1182_v24, %v1151_v57 }
 0x1fe   :  { %vm445_vm12 = vcmp.lt.f32.partialorder %v366_v49, 0.2  ;;  %586 = vst [vmem:[#allocation8 + $0x50] sm:$0xff] %v570_v2  ;;  %v565_v20 = vsel %vm549_vm14, 0.0, %v494_v21  ;;  %v486_v53 = vsel %vm470_vm1, 1.0, %v438_v3  ;;  %v685_v60 = vpop.f32.mrb[6].mxu0  ;;  %vm558_vm1 = vcmp.eq.s32.totalorder %v1184_v9, %v1151_v57 }
 0x1ff   :  { %vm461_vm10 = vcmp.gt.f32.partialorder %v366_v49, 0.8  ;;  %581 = vst [vmem:[#allocation8 + $0x28] sm:$0xff] %v565_v20  ;;  %v502_v5 = vsel %vm454_vm8, 0.0, %v486_v53  ;;  %vm453_vm11 = vcmp.lt.f32.partialorder %v406_v52, 0.2 }
 0x200   :  { %v477_v4 = vsel %vm461_vm10, 1.0, %v429_v40  ;;  %vm469_vm15 = vcmp.gt.f32.partialorder %v406_v52, 0.8  ;;  %v431_v6 = vld [vmem:[#allocation7 + $0x30] sm:$0xff]  ;;  %v573_v7 = vsel %vm557_vm9, 0.0, %v502_v5  ;;  %v697_v8 = vpop.f32.mrb[6].mxu1 }
 0x201   :  { %v493_v15 = vsel %vm445_vm12, 0.0, %v477_v4  ;;  %v485_v18 = vsel %vm469_vm15, 1.0, %v437_v33  ;;  %vm448_vm14 = vcmp.lt.f32.partialorder %v685_v60, 0.2  ;;  %589 = vst [vmem:[#allocation8 + $0x68] sm:$0xff] %v573_v7  ;;  %v439_v26 = vld [vmem:[#allocation7 + $0x70] sm:$0xff] }
 0x202   :  { %v564_v22 = vsel %vm548_vm7, 0.0, %v493_v15  ;;  %v501_v23 = vsel %vm453_vm11, 0.0, %v485_v18  ;;  %vm464_vm5 = vcmp.gt.f32.partialorder %v685_v60, 0.8  ;;  %vm456_vm3 = vcmp.lt.f32.partialorder %v697_v8, 0.2 }
 0x203   :  { %580 = vst [vmem:[#allocation8 + $0x20] sm:$0xff] %v564_v22  ;;  %v572_v10 = vsel %vm556_vm13, 0.0, %v501_v23  ;;  %v480_v27 = vsel %vm464_vm5, 1.0, %v432_v56  ;;  %vm472_vm9 = vcmp.gt.f32.partialorder %v697_v8, 0.8  ;;  %v376_v29 = vpop.f32.mrb[7].mxu0 }
 0x204   :  { %v416_v28 = vpop.f32.mrb[7].mxu1  ;;  %588 = vst [vmem:[#allocation8 + $0x60] sm:$0xff] %v572_v10  ;;  %v496_v11 = vsel %vm448_vm14, 0.0, %v480_v27  ;;  %v488_v30 = vsel %vm472_vm9, 1.0, %v440_v61  ;;  %vm447_vm7 = vcmp.lt.f32.partialorder %v376_v29, 0.2 }
 0x205   :  { %vm463_vm0 = vcmp.gt.f32.partialorder %v376_v29, 0.8  ;;  %v567_v31 = vsel %vm551_vm6, 0.0, %v496_v11  ;;  %v504_v34 = vsel %vm456_vm3, 0.0, %v488_v30  ;;  %vm455_vm13 = vcmp.lt.f32.partialorder %v416_v28, 0.2 }
 0x206   :  { %v479_v14 = vsel %vm463_vm0, 1.0, %v431_v6  ;;  %583 = vst [vmem:[#allocation8 + $0x38] sm:$0xff] %v567_v31  ;;  %v575_v35 = vsel %vm559_vm2, 0.0, %v504_v34  ;;  %vm471_vm8 = vcmp.gt.f32.partialorder %v416_v28, 0.8 }
 0x207   :  { %v495_v38 = vsel %vm447_vm7, 0.0, %v479_v14  ;;  %591 = vst [vmem:[#allocation8 + $0x78] sm:$0xff] %v575_v35  ;;  %v487_v13 = vsel %vm471_vm8, 1.0, %v439_v26 }
 0x208   :  { %v566_v25 = vsel %vm550_vm4, 0.0, %v495_v38  ;;  %v503_v12 = vsel %vm455_vm13, 0.0, %v487_v13 }
 0x209   :  { %582 = vst [vmem:[#allocation8 + $0x30] sm:$0xff] %v566_v25  ;;  %v574_v39 = vsel %vm558_vm1, 0.0, %v503_v12 }
 0x20a   :  { %590 = vst [vmem:[#allocation8 + $0x70] sm:$0xff] %v574_v39 }
 0x20b   :  { %893 = shalt.err (!%p890_p0)
}
 0x20c   :  { %s894_s27 = scalar_lea.hbm %s1276_s3, 2048 }
 0x20d   :  { %p895_p1 = scmp.ne.s32.totalorder %s1276_s3, %s894_s27  ;;  %p898_p2 = scmp.lt.u32.totalorder %s894_s27, %s1276_s3 }
 0x20f   :  { %p900_p3 = pnand %p898_p2, %p895_p1 }
 0x211   :  { %903 = shalt.err (!%p900_p3)
}
 0x212   :  { %603 = dma.vmem_to_hbm [thread:$0]  %s598_s21, 2048, %s1276_s3, [#allocation4], %s912_s24, %s912_s24, %s913_s25  }
 0x213   :  { %908 = dma.done.wait [#allocation4], 2048  }
 0x214   :  { %909 = vsyncadd [#allocation4], 4294965248 }
 0x215   :  { %607 = vsyncpa [#allocation3], 1 }
 0x216   :  { %608 = vsyncpa [#allocation6], 1 }
 0x217   :  { %609 = vsyncpa [#allocation4], 1 }

</bundles_post_ra>
